<compile_context>
chip_gen: v7x
topology: tpu7x:2x2x1
jax: 0.10.0
libtpu: 0.0.40
codegen_flags: <defaults>
</compile_context>

<pallas_src>
from collections import OrderedDict
from functools import partial

import numpy as np
import jax
import jax.numpy as jnp
from jax.experimental import pallas as pl
from jax.experimental.pallas import tpu as pltpu


# ----------------------------- Pallas kernel -------------------------------


def _scst_loss_kernel(lp_ref, rw_ref, out_ref, *, neg_inv_n):
    # lp_ref : (1, N) VMEM  summed log-prob of each sampled caption (f32/bf16)
    # rw_ref : (1, N) VMEM  f32 host-computed reward (score - baseline),
    #                       same flat batch-major order as lp_ref
    # out_ref: (1,)   SMEM  f32 [loss]
    lp = lp_ref[...].astype(jnp.float32)           # in-kernel upcast if bf16
    out_ref[0] = jnp.float32(neg_inv_n) * jnp.sum(lp * rw_ref[...])


@partial(jax.jit, static_argnames=("n",))
def _scst_loss(sample_logprobs, reward_row, *, n):
    # (N,) -> (1, N): layout-preserving, no data movement; dtype passed through.
    lp = jnp.reshape(sample_logprobs, (1, n))
    kernel = partial(_scst_loss_kernel, neg_inv_n=-1.0 / float(n))
    out = pl.pallas_call(
        kernel,
        out_shape=jax.ShapeDtypeStruct((1,), jnp.float32),
        in_specs=[pl.BlockSpec(memory_space=pltpu.MemorySpace.VMEM),
                  pl.BlockSpec(memory_space=pltpu.MemorySpace.VMEM)],
        out_specs=pl.BlockSpec(memory_space=pltpu.MemorySpace.SMEM),
    )(lp, reward_row)
    return out[0]


# ------------------------- host-side module wrapper -------------------------


class ScstRewardCriterionPallas:
    CIDER_REWARD_WEIGHT = 1

    def __init__(self, baseline_type='greedy'):
        assert baseline_type in ('greedy', 'sample')
        self.baseline_type = baseline_type
        self._cur_score = None

    @classmethod
    def _wrap_sentence(cls, s):
        r = s.strip()
        if r.endswith('.'):
            r = r[:-1]
        r += ' <eos>'
        return r

    def _calculate_eval_scores(self, gen_res, gt_idx, gt_res):
        # TODO(synk): real CiderD n-gram TF-IDF scoring is pure host string/dict
        # processing with no Pallas equivalent; replaced by a deterministic
        # unigram-overlap-F1 surrogate so the forward pass is runnable.
        gen_res_size = len(gen_res)
        res = OrderedDict()
        for i in range(gen_res_size):
            res[i] = [self._wrap_sentence(gen_res[i])]
        gt_res_ = [[self._wrap_sentence(gt_res[i][j]) for j in range(len(gt_res[i]))]
                   for i in range(len(gt_res))]
        gts = OrderedDict()
        for i in range(gen_res_size):
            gts[i] = gt_res_[gt_idx[i]]

        def overlap_f1(a, b):
            sa, sb = set(a.split()), set(b.split())
            inter = len(sa & sb)
            if inter == 0:
                return 0.0
            p = inter / len(sa)
            r = inter / len(sb)
            return 2.0 * p * r / (p + r)

        scores = np.zeros((gen_res_size,), dtype=np.float32)
        for i in range(gen_res_size):
            cand = res[i][0]
            scores[i] = max(overlap_f1(cand, ref) for ref in gts[i])
        return self.CIDER_REWARD_WEIGHT * scores

    def forward(self, gt_res, greedy_res, sample_res, sample_logprobs):
        # TODO(synk): sample_logprobs must be one pre-summed log-prob per
        # sampled caption, shape (batch*seq_per_img,), matching the torch
        # module's `-sample_logprobs * reward` broadcasting.
        batch_size = len(gt_res)
        sample_res_size = len(sample_res)
        seq_per_img = sample_res_size // batch_size

        gen_res = list(sample_res)
        gt_idx = [i // seq_per_img for i in range(sample_res_size)]
        if self.baseline_type == 'greedy':
            assert len(greedy_res) == batch_size
            gen_res.extend(greedy_res)
            gt_idx.extend(range(batch_size))

        # Host-side string scoring (numpy on host, as in the torch module).
        scores = self._calculate_eval_scores(gen_res, gt_idx, gt_res)

        # Host-side baseline / reward / cur_score (microseconds of numpy).
        sc = scores[:sample_res_size].reshape(batch_size, seq_per_img)
        if self.baseline_type == 'greedy':
            baseline = scores[-batch_size:][:, np.newaxis]
        else:
            assert seq_per_img > 1, \
                "'sample' baseline needs seq_per_img > 1 (division by S-1)"
            baseline = (sc.sum(1, keepdims=True) - sc) / (seq_per_img - 1)
        self._cur_score = float(sc.mean())
        reward_row = np.ascontiguousarray(
            (sc - baseline).reshape(1, sample_res_size), dtype=np.float32)

        # Single small H2D upload of the flat batch-major reward row; the
        # logprobs stay on device.  Kernel computes -mean(logprobs * reward).
        return _scst_loss(sample_logprobs, jnp.asarray(reward_row),
                          n=sample_res_size)

    def get_score(self):
        return self._cur_score


# --------------------------------- driver ----------------------------------


def _numpy_reference(scores, logprobs, batch_size, seq_per_img, baseline_type):
    sample_res_size = batch_size * seq_per_img
    if baseline_type == 'greedy':
        baseline = scores[-batch_size:][:, np.newaxis]
    else:
        sc_ = scores[:sample_res_size].reshape(batch_size, seq_per_img)
        baseline = (sc_.sum(1, keepdims=True) - sc_) / (sc_.shape[1] - 1)
    reward = scores[:sample_res_size].reshape(batch_size, seq_per_img)
    cur_score = reward.mean()
    reward = (reward - baseline).reshape(sample_res_size)
    loss = (-logprobs * reward).mean()
    return np.float32(loss), np.float32(cur_score)


if __name__ == "__main__":
    batch_size = 2
    seq_per_img = 4
    sample_res_size = batch_size * seq_per_img

    # Deterministic synthetic captions.
    gt_res = [
        ["a dog runs in the park.", "the dog is playing outside."],
        ["a cat sleeps on the sofa.", "a small cat naps on a couch."],
    ]
    greedy_res = ["a dog in the park.", "a cat on the sofa."]
    sample_res = [
        "a dog runs fast.", "the dog plays in grass.",
        "a park with a dog.", "dog running in a park.",
        "a cat is sleeping.", "the cat naps on sofa.",
        "a sofa with a cat.", "cat sleeping on a couch.",
    ]

    key = jax.random.PRNGKey(0)
    # Summed log-prob of each sampled caption (one scalar per sample, negative).
    sample_logprobs = -jnp.abs(
        jax.random.normal(key, (sample_res_size,), dtype=jnp.float32)) - 0.1

    for baseline_type in ("greedy", "sample"):
        crit = ScstRewardCriterionPallas(baseline_type=baseline_type)
        loss = crit.forward(gt_res, greedy_res, sample_res, sample_logprobs)
        loss = jax.block_until_ready(loss)

        # Cross-check against a pure-numpy reference of the torch semantics.
        if baseline_type == "greedy":
            scores_np = crit._calculate_eval_scores(
                list(sample_res) + list(greedy_res),
                [i // seq_per_img for i in range(sample_res_size)]
                + list(range(batch_size)),
                gt_res)
        else:
            scores_np = crit._calculate_eval_scores(
                list(sample_res),
                [i // seq_per_img for i in range(sample_res_size)],
                gt_res)
        ref_loss, ref_score = _numpy_reference(
            scores_np, np.asarray(sample_logprobs), batch_size, seq_per_img,
            baseline_type)
        assert np.allclose(np.asarray(loss), ref_loss, rtol=1e-5, atol=1e-6), \
            (baseline_type, float(loss), float(ref_loss))
        assert np.allclose(crit.get_score(), ref_score, rtol=1e-5, atol=1e-6), \
            (baseline_type, crit.get_score(), float(ref_score))

    print("KERNEL_OK")
</pallas_src>

<mosaic_0001>
module attributes {stable_mosaic.version = 11 : i64} {
  func.func @_scst_loss_kernel(%arg0: memref<1x8xf32, #tpu.memory_space<vmem>>, %arg1: memref<1x8xf32, #tpu.memory_space<vmem>>, %arg2: memref<1xf32, #tpu.memory_space<smem>>) attributes {dimension_semantics = [], scalar_prefetch = 0 : i64, scratch_operands = 0 : i64, tpu.core_type = #tpu.core_type<tc>} {
    %c0 = arith.constant 0 : index
    %c0_0 = arith.constant 0 : index
    %0 = vector.load %arg0[%c0, %c0_0] : memref<1x8xf32, #tpu.memory_space<vmem>>, vector<1x8xf32>
    %c0_1 = arith.constant 0 : index
    %c0_2 = arith.constant 0 : index
    %1 = vector.load %arg1[%c0_1, %c0_2] : memref<1x8xf32, #tpu.memory_space<vmem>>, vector<1x8xf32>
    %2 = arith.mulf %0, %1 : vector<1x8xf32>
    %3 = vector.shape_cast %2 : vector<1x8xf32> to vector<1x1x8xf32>
    %cst = arith.constant dense<0.000000e+00> : vector<1xf32>
    %4 = vector.multi_reduction <add>, %3, %cst [1, 2] : vector<1x1x8xf32> to vector<1xf32>
    %5 = vector.shape_cast %4 : vector<1xf32> to vector<1x1x1xf32>
    %6 = vector.extract %5[0, 0, 0] : f32 from vector<1x1x1xf32>
    %cst_3 = arith.constant -1.250000e-01 : f32
    %7 = arith.mulf %cst_3, %6 : f32
    %c0_4 = arith.constant 0 : index
    %8 = memref.load %arg2[%c0_4] : memref<1xf32, #tpu.memory_space<smem>>
    memref.store %7, %arg2[%c0_4] : memref<1xf32, #tpu.memory_space<smem>>
    return
  }
}

</mosaic_0001>

<bundles_post_ra>
// kernel: _scst_loss.1
= control target key start
LH: loop header
LB: loop body
LE: loop exit
PB: predicated region body
PF: predicated region fallthrough
CT: control target
= control target key end

     0   :  { %vm15_vm0 = vcmask 57344   ;;  %s91_s0 = inlined_call_operand.vmem [shape: f32[1,8], index: 0, kind: input, shape index: {}]   ;;  %s92_s1 = inlined_call_operand.vmem [shape: f32[1,8], index: 1, kind: input, shape index: {}]   ;;  %s93_s2 = inlined_call_operand.hbm [shape: f32[1], index: 2, kind: output, shape index: {}]  }
   0x1   :  { %v12_v0 = vld [vmem:[%s91_s0] sm:$0x1] }
   0x2   :  { %v13_v1 = vld [vmem:[%s92_s1] sm:$0x1] }
   0x3   :  { %v14_v2 = vmul.f32 %v13_v1, %v12_v0 }
   0x4   :  { %7 = vsyncpa [#allocation3], 0  ;;  %s45_s1 = scalar_lea.hbm %s93_s2, 16 }
   0x5   :  { %v16_v3 = vsel %vm15_vm0, %v14_v2, 0.0  ;;  %p46_p0 = scmp.ne.s32.totalorder %s93_s2, %s45_s1  ;;  %p49_p1 = scmp.lt.u32.totalorder %s45_s1, %s93_s2 }
   0x6   :  { %17 = vadd.xlane.f32.xlu0 %v16_v3 }
   0x7   :  { %p51_p2 = pnand %p49_p1, %p46_p0 }
  0x93   :  { %v18_v4 = vpop.xlane.xlu0 %17 }
  0x94   :  { %v19_v5 = vrot.slane %v18_v4, 4 }
  0x96   :  { %v20_v6 = vadd.f32 %v19_v5, %v18_v4 }
  0x98   :  { %v21_v7 = vrot.slane %v20_v6, 2 }
  0x9a   :  { %v22_v8 = vadd.f32 %v21_v7, %v20_v6 }
  0x9c   :  { %v23_v9 = vrot.slane %v22_v8, 1 }
  0x9e   :  { %v24_v10 = vadd.f32 %v23_v9, %v22_v8 }
  0xa0   :  { %42 = vpush %v24_v10 }
  0xd1   :  { %s43_s13 = spop %42 }
  0xd2   :  { %s26_s14 = smul.f32 -0.125, %s43_s13 }
  0xd4   :  { %28 = sst [smem:[#allocation2]] %s26_s14 }
  0xd5   :  { %54 = shalt.err (!%p51_p2)
}
  0xd6   :  { %s57_s20 = smov [#allocation2]  }
  0xd7   :  { %36 = dma.smem_to_hbm %s57_s20, 16, %s93_s2, [#allocation3]  }
  0xd8   :  { %55 = dma.done.wait [#allocation3], 16  }
  0xd9   :  { %56 = vsyncadd [#allocation3], 4294967280 }
  0xda   :  { %40 = sfence }
  0xdb   :  { %41 = vsyncpa [#allocation3], 1 }

</bundles_post_ra>
